<compile_context>
chip_gen: v7x
topology: tpu7x:2x2x1
jax: 0.10.0
libtpu: 0.0.40
codegen_flags: <defaults>
</compile_context>

<pallas_src>
import jax
import jax.numpy as jnp
from jax.experimental import pallas as pl
from jax.experimental.pallas import tpu as pltpu


def _dice_partial_kernel(p_ref, t_ref, inter_out_ref, tot_out_ref,
                         inter_acc, tot_acc):
    """Accumulate per-channel partial sums for one batch element.

    p_ref / t_ref      : (C, hw_block) VMEM tiles of preds / targets
    inter_out_ref      : (C, 1) per-batch-element  sum(t * p)
    tot_out_ref        : (C, 1) per-batch-element  sum(t) + sum(p)
    inter_acc, tot_acc : (C, hw_block) float32 lane-dense accumulators
    """
    j = pl.program_id(1)

    @pl.when(j == 0)
    def _init():
        inter_acc[...] = jnp.zeros_like(inter_acc)
        tot_acc[...] = jnp.zeros_like(tot_acc)

    p = p_ref[...].astype(jnp.float32)
    t = t_ref[...].astype(jnp.float32)

    # Full-width VPU work only in the hot loop (memory bound; no per-step
    # XLU reduce, no narrow masked stores).
    inter_acc[...] += t * p
    tot_acc[...] += t + p

    @pl.when(j == pl.num_programs(1) - 1)
    def _finalize():
        # Single cross-lane reduce per batch element.
        inter_out_ref[...] = jnp.sum(inter_acc[...], axis=1, keepdims=True)
        tot_out_ref[...] = jnp.sum(tot_acc[...], axis=1, keepdims=True)


def _pick_hw_block(hw, c, itemsize, vmem_budget_bytes, max_lanes):
    """Largest lane-block that fits the VMEM budget with no extra padding.

    Budget accounts for 2 inputs x 2 pipeline buffers of the sublane-padded
    input tile plus the two float32 full-width accumulators.
    Returns (hw_block, padded_hw).
    """
    cpad = ((c + 7) // 8) * 8
    per_lane_bytes = cpad * (4 * itemsize + 2 * 4)
    cap = max(128, min(max_lanes, vmem_budget_bytes // per_lane_bytes))
    cap = (cap // 128) * 128
    if hw <= cap:
        # One full-row block: block == full dim, so no (8,128) constraint and
        # no padding needed.
        return hw, hw
    hw_pad = pl.cdiv(hw, 128) * 128
    m = hw_pad // 128
    kmax = cap // 128
    best = 1
    k = 1
    while k * k <= m:
        if m % k == 0:
            if k <= kmax:
                best = max(best, k)
            if (m // k) <= kmax:
                best = max(best, m // k)
        k += 1
    return best * 128, hw_pad


def dice_index(preds, targets, *, mesure_background=False, smooth=1e-07,
               vmem_budget_bytes=20 * 1024 * 1024, max_lanes=32768):
    """JAX/Pallas equivalent of DiceIndex.forward (returns a float32 scalar)."""
    n, c, h, w = preds.shape
    hw = h * w

    # Free reshapes (contiguous): NCHW -> (N, C, H*W). No transpose, no slice.
    p = preds.reshape(n, c, hw)
    t = targets.reshape(n, c, hw)

    blk, hw_pad = _pick_hw_block(hw, c, preds.dtype.itemsize,
                                 vmem_budget_bytes, max_lanes)
    if hw_pad != hw:
        # Rare path (only when H*W spans multiple blocks and is not
        # 128-aligned); zero padding does not perturb any of the sums.
        pad = ((0, 0), (0, 0), (0, hw_pad - hw))
        p = jnp.pad(p, pad)
        t = jnp.pad(t, pad)
    nblk = hw_pad // blk

    inter_part, tot_part = pl.pallas_call(
        _dice_partial_kernel,
        out_shape=(
            jax.ShapeDtypeStruct((n, c, 1), jnp.float32),
            jax.ShapeDtypeStruct((n, c, 1), jnp.float32),
        ),
        grid_spec=pltpu.PrefetchScalarGridSpec(
            num_scalar_prefetch=0,
            grid=(n, nblk),
            in_specs=[
                pl.BlockSpec((None, c, blk), lambda i, j: (i, 0, j)),
                pl.BlockSpec((None, c, blk), lambda i, j: (i, 0, j)),
            ],
            out_specs=(
                pl.BlockSpec((None, c, 1), lambda i, j: (i, 0, 0)),
                pl.BlockSpec((None, c, 1), lambda i, j: (i, 0, 0)),
            ),
            scratch_shapes=[
                pltpu.VMEM((c, blk), jnp.float32),  # sum(t * p) accumulator
                pltpu.VMEM((c, blk), jnp.float32),  # sum(t + p) accumulator
            ],
        ),
        compiler_params=pltpu.CompilerParams(
            # Batch axis is independent -> "parallel" (megacore split on
            # v7x); the lane-block axis is the in-core reduction -> "arbitrary".
            dimension_semantics=("parallel", "arbitrary"),
            vmem_limit_bytes=48 * 1024 * 1024,
        ),
    )(p, t)

    # Tiny O(N*C) combine: sum partials over batch, dice per channel, then
    # drop the background channel from the mean (instead of slicing inputs).
    inter_c = jnp.sum(inter_part[:, :, 0], axis=0)        # (C,)
    tot_c = jnp.sum(tot_part[:, :, 0], axis=0)            # (C,)
    dice = 2.0 * inter_c / (tot_c + jnp.float32(smooth))  # (C,)
    if not mesure_background:
        dice = dice[1:]  # NOTE: C==1 here gives NaN, same as the reference
    return jnp.mean(dice)


def _dice_ref(preds, targets, *, mesure_background=False, smooth=1e-07):
    """Pure-JAX reference mirroring the PyTorch module, for validation."""
    if not mesure_background:
        preds = preds[:, 1:]
        targets = targets[:, 1:]
    preds = preds.astype(jnp.float32)
    targets = targets.astype(jnp.float32)
    intersection = jnp.sum(targets * preds, axis=(0, 2, 3))
    total_pixels = jnp.sum(targets, axis=(0, 2, 3)) + jnp.sum(preds, axis=(0, 2, 3))
    return jnp.mean(2.0 * intersection / (total_pixels + smooth))


if __name__ == "__main__":
    key = jax.random.PRNGKey(0)
    k1, k2 = jax.random.split(key)

    batch, channels, height, width = 2, 4, 16, 16

    # Deterministic synthetic inputs: soft predictions and one-hot targets.
    logits = jax.random.normal(k1, (batch, channels, height, width), dtype=jnp.float32)
    preds = jax.nn.softmax(logits, axis=1)
    labels = jax.random.randint(k2, (batch, height, width), 0, channels)
    targets = jax.nn.one_hot(labels, channels, axis=1, dtype=jnp.float32)

    result = dice_index(preds, targets, mesure_background=False, smooth=1e-07)
    result = jax.block_until_ready(result)

    expected = _dice_ref(preds, targets, mesure_background=False, smooth=1e-07)
    assert jnp.allclose(result, expected, rtol=1e-5, atol=1e-6), (result, expected)

    print("KERNEL_OK")
</pallas_src>

<mosaic_0001>
module attributes {stable_mosaic.version = 11 : i64} {
  func.func @_dice_partial_kernel(%arg0: i32, %arg1: i32, %arg2: memref<1x4x256xf32, #tpu.memory_space<vmem>>, %arg3: memref<1x4x256xf32, #tpu.memory_space<vmem>>, %arg4: memref<1x4x1xf32, #tpu.memory_space<vmem>>, %arg5: memref<1x4x1xf32, #tpu.memory_space<vmem>>, %arg6: memref<4x256xf32, #tpu.memory_space<vmem>>, %arg7: memref<4x256xf32, #tpu.memory_space<vmem>>) attributes {dimension_semantics = [#tpu.dimension_semantics<parallel>, #tpu.dimension_semantics<arbitrary>], iteration_bounds = array<i64: 2, 1>, scalar_prefetch = 0 : i64, scratch_operands = 2 : i64, tpu.core_type = #tpu.core_type<tc>, window_params = [{transform_indices = @transform_0, window_bounds = array<i64: 1, 4, 256>}, {transform_indices = @transform_1, window_bounds = array<i64: 1, 4, 256>}, {transform_indices = @transform_2, window_bounds = array<i64: 1, 4, 1>}, {transform_indices = @transform_3, window_bounds = array<i64: 1, 4, 1>}]} {
    %c0_i32 = arith.constant 0 : i32
    %0 = arith.cmpi eq, %arg1, %c0_i32 : i32
    %1 = arith.extui %0 : i1 to i32
    %c0_i32_0 = arith.constant 0 : i32
    %2 = arith.cmpi ne, %1, %c0_i32_0 : i32
    scf.if %2 {
      %cst = arith.constant 0.000000e+00 : f32
      %18 = vector.broadcast %cst : f32 to vector<4x256xf32>
      %c0_16 = arith.constant 0 : index
      %c0_17 = arith.constant 0 : index
      %19 = vector.load %arg6[%c0_16, %c0_17] : memref<4x256xf32, #tpu.memory_space<vmem>>, vector<4x256xf32>
      tpu.vector_store %arg6[%c0_16, %c0_17], %18 {strides = array<i32>} : memref<4x256xf32, #tpu.memory_space<vmem>>, vector<4x256xf32>,
      %cst_18 = arith.constant 0.000000e+00 : f32
      %20 = vector.broadcast %cst_18 : f32 to vector<4x256xf32>
      %c0_19 = arith.constant 0 : index
      %c0_20 = arith.constant 0 : index
      %21 = vector.load %arg7[%c0_19, %c0_20] : memref<4x256xf32, #tpu.memory_space<vmem>>, vector<4x256xf32>
      tpu.vector_store %arg7[%c0_19, %c0_20], %20 {strides = array<i32>} : memref<4x256xf32, #tpu.memory_space<vmem>>, vector<4x256xf32>,
    } else {
    }
    %c0 = arith.constant 0 : index
    %c0_1 = arith.constant 0 : index
    %c0_2 = arith.constant 0 : index
    %3 = vector.load %arg2[%c0, %c0_1, %c0_2] : memref<1x4x256xf32, #tpu.memory_space<vmem>>, vector<1x4x256xf32>
    %4 = vector.shape_cast %3 : vector<1x4x256xf32> to vector<4x256xf32>
    %c0_3 = arith.constant 0 : index
    %c0_4 = arith.constant 0 : index
    %c0_5 = arith.constant 0 : index
    %5 = vector.load %arg3[%c0_3, %c0_4, %c0_5] : memref<1x4x256xf32, #tpu.memory_space<vmem>>, vector<1x4x256xf32>
    %6 = vector.shape_cast %5 : vector<1x4x256xf32> to vector<4x256xf32>
    %c0_6 = arith.constant 0 : index
    %c0_7 = arith.constant 0 : index
    %7 = vector.load %arg6[%c0_6, %c0_7] : memref<4x256xf32, #tpu.memory_space<vmem>>, vector<4x256xf32>
    %8 = arith.mulf %6, %4 : vector<4x256xf32>
    %9 = arith.addf %7, %8 : vector<4x256xf32>
    %c0_8 = arith.constant 0 : index
    %c0_9 = arith.constant 0 : index
    %10 = vector.load %arg6[%c0_8, %c0_9] : memref<4x256xf32, #tpu.memory_space<vmem>>, vector<4x256xf32>
    tpu.vector_store %arg6[%c0_8, %c0_9], %9 {strides = array<i32>} : memref<4x256xf32, #tpu.memory_space<vmem>>, vector<4x256xf32>,
    %c0_10 = arith.constant 0 : index
    %c0_11 = arith.constant 0 : index
    %11 = vector.load %arg7[%c0_10, %c0_11] : memref<4x256xf32, #tpu.memory_space<vmem>>, vector<4x256xf32>
    %12 = arith.addf %6, %4 : vector<4x256xf32>
    %13 = arith.addf %11, %12 : vector<4x256xf32>
    %c0_12 = arith.constant 0 : index
    %c0_13 = arith.constant 0 : index
    %14 = vector.load %arg7[%c0_12, %c0_13] : memref<4x256xf32, #tpu.memory_space<vmem>>, vector<4x256xf32>
    tpu.vector_store %arg7[%c0_12, %c0_13], %13 {strides = array<i32>} : memref<4x256xf32, #tpu.memory_space<vmem>>, vector<4x256xf32>,
    %c0_i32_14 = arith.constant 0 : i32
    %15 = arith.cmpi eq, %arg1, %c0_i32_14 : i32
    %16 = arith.extui %15 : i1 to i32
    %c0_i32_15 = arith.constant 0 : i32
    %17 = arith.cmpi ne, %16, %c0_i32_15 : i32
    scf.if %17 {
      %c0_16 = arith.constant 0 : index
      %c0_17 = arith.constant 0 : index
      %18 = vector.load %arg6[%c0_16, %c0_17] : memref<4x256xf32, #tpu.memory_space<vmem>>, vector<4x256xf32>
      %cst = arith.constant dense<0.000000e+00> : vector<4xf32>
      %19 = vector.multi_reduction <add>, %18, %cst [1] : vector<4x256xf32> to vector<4xf32>
      %20 = vector.shape_cast %19 : vector<4xf32> to vector<4x1xf32>
      %c0_18 = arith.constant 0 : index
      %c0_19 = arith.constant 0 : index
      %c0_20 = arith.constant 0 : index
      %21 = vector.load %arg4[%c0_18, %c0_19, %c0_20] : memref<1x4x1xf32, #tpu.memory_space<vmem>>, vector<1x4x1xf32>
      %22 = vector.shape_cast %21 : vector<1x4x1xf32> to vector<4x1xf32>
      %23 = vector.shape_cast %20 : vector<4x1xf32> to vector<1x4x1xf32>
      tpu.vector_store %arg4[%c0_18, %c0_19, %c0_20], %23 {strides = array<i32>} : memref<1x4x1xf32, #tpu.memory_space<vmem>>, vector<1x4x1xf32>,
      %c0_21 = arith.constant 0 : index
      %c0_22 = arith.constant 0 : index
      %24 = vector.load %arg7[%c0_21, %c0_22] : memref<4x256xf32, #tpu.memory_space<vmem>>, vector<4x256xf32>
      %cst_23 = arith.constant dense<0.000000e+00> : vector<4xf32>
      %25 = vector.multi_reduction <add>, %24, %cst_23 [1] : vector<4x256xf32> to vector<4xf32>
      %26 = vector.shape_cast %25 : vector<4xf32> to vector<4x1xf32>
      %c0_24 = arith.constant 0 : index
      %c0_25 = arith.constant 0 : index
      %c0_26 = arith.constant 0 : index
      %27 = vector.load %arg5[%c0_24, %c0_25, %c0_26] : memref<1x4x1xf32, #tpu.memory_space<vmem>>, vector<1x4x1xf32>
      %28 = vector.shape_cast %27 : vector<1x4x1xf32> to vector<4x1xf32>
      %29 = vector.shape_cast %26 : vector<4x1xf32> to vector<1x4x1xf32>
      tpu.vector_store %arg5[%c0_24, %c0_25, %c0_26], %29 {strides = array<i32>} : memref<1x4x1xf32, #tpu.memory_space<vmem>>, vector<1x4x1xf32>,
    } else {
    }
    return
  }
  func.func @transform_0(%arg0: i32, %arg1: i32) -> (i32, i32, i32) {
    %c0_i32 = arith.constant 0 : i32
    %c0_i32_0 = arith.constant 0 : i32
    return %arg0, %c0_i32, %arg1 : i32, i32, i32
  }
  func.func @transform_1(%arg0: i32, %arg1: i32) -> (i32, i32, i32) {
    %c0_i32 = arith.constant 0 : i32
    %c0_i32_0 = arith.constant 0 : i32
    return %arg0, %c0_i32, %arg1 : i32, i32, i32
  }
  func.func @transform_2(%arg0: i32, %arg1: i32) -> (i32, i32, i32) {
    %c0_i32 = arith.constant 0 : i32
    %c0_i32_0 = arith.constant 0 : i32
    %c0_i32_1 = arith.constant 0 : i32
    return %arg0, %c0_i32, %c0_i32_0 : i32, i32, i32
  }
  func.func @transform_3(%arg0: i32, %arg1: i32) -> (i32, i32, i32) {
    %c0_i32 = arith.constant 0 : i32
    %c0_i32_0 = arith.constant 0 : i32
    %c0_i32_1 = arith.constant 0 : i32
    return %arg0, %c0_i32, %c0_i32_0 : i32, i32, i32
  }
}

</mosaic_0001>

<bundles_post_ra>
// kernel: tpu_custom_call.1
= control target key start
LH: loop header
LB: loop body
LE: loop exit
PB: predicated region body
PF: predicated region fallthrough
CT: control target
= control target key end

     0   :  { %9 = vsyncpa [#allocation5], 0  ;;  %s824_s0 = inlined_call_operand.hbm [shape: f32[2,4,256], index: 0, kind: input, shape index: {}]   ;;  %s825_s1 = inlined_call_operand.hbm [shape: f32[2,4,256], index: 1, kind: input, shape index: {}]   ;;  %s826_s2 = inlined_call_operand.vmem [shape: f32[2,4,1], index: 2, kind: output, shape index: {0}]   ;;  %s827_s3 = inlined_call_operand.vmem [shape: f32[2,4,1], index: 3, kind: output, shape index: {1}]  }
   0x1   :  { %11 = vsyncpa [#allocation5 + $0x1], 0 }
   0x2   :  { %12 = vsyncpa [#allocation7], 0 }
   0x3   :  { %14 = vsyncpa [#allocation7 + $0x1], 0  ;;  %s649_s12 = smov 0   ;;  %s651_s13 = smov 0  }
   0x4   :  { %s653_s14 = smov 0   ;;  %s655_s15 = smov 0  }
   0x5   :  { %s657_s16 = smov 0   ;;  %s659_s17 = smov 0  }
   0x6 LB: > { %s432_s18 = sadd.s32 4294967295, %s625_s17   ;;  %s32_s19 = sadd.s32 1, %s621_s16  ;;  %s625_s17 = sphi %s659_s17, %s20_s17   ;;  %s621_s16 = sphi %s657_s16, %s841_s16   ;;  %s617_s15 = sphi %s655_s15, %s840_s15   ;;  %s613_s14 = sphi %s653_s14, %s839_s14   ;;  %s609_s13 = sphi %s651_s13, %s838_s13   ;;  %s605_s12 = sphi %s649_s12, %s837_s12  }
   0x7   : > { %p34_p0 = scmp.ge.s32.totalorder %s32_s19, 2  ;;  %s41_s20 = sadd.s32 1, %s613_s14 }
   0x8   : > { %p48_p1 = scmp.ne.s32.totalorder %s613_s14, %s609_s13  ;;  %p49_p2 = scmp.eq.s32.totalorder %s625_s17, 0 }
   0x9   : > { %s843_s19 = smov (%p34_p0, %s32_s19), 0  ;;  %p54_p4 = scmp.ne.s32.totalorder %s609_s13, %s605_s12 }
   0xa   : > { %p685_p3 = por %p49_p2, %p48_p1  ;;  %s36_s22 = ssub.s32 %s621_s16, %s843_s19 }
   0xb   : > { %p55_p5 = scmp.eq.s32.totalorder %s432_s18, 0  ;;  %p39_p6 = scmp.eq.s32.totalorder %s36_s22, 0 }
   0xc   : > { %p462_p8 = scmp.lt.s32.totalorder %s625_s17, 2  ;;  %s701_s25 = sand.u32 1, %s613_s14  }
   0xd   : > { %p692_p7 = por %p55_p5, %p54_p4  ;;  %s449_s26 = sshll.u32 %s621_s16, 7 }
   0xe   : > { %s698_s24 = scalar_select %p39_p6, %s613_s14, %s41_s20  }
   0xf   : > { %s830_s23 = scalar_select %p692_p7, 1, 0 }
  0x10   : > { %s436_s27 = sshll.u32 %s701_s25, 3  ;;  %s710_s30 = scalar_lea.hbm %s824_s0, %s449_s26 }
  0x11   : > { %s162_s4 = scalar_lea.vmem [#allocation4], %s436_s27  ;;  %p716_p9 = pnand %p462_p8, %p685_p3 }
  0x12   : > { %s172_s5 = sshll.u32 %s162_s4, 4  ;;  %s159_s7 = scalar_lea.sflag [#allocation5], %s701_s25  ;;  %s720_s5 = int_to_ptr.vmem [resolvable:$true] %s172_s5 }
  0x13   : > { %s511_s8 = scalar_lea.hbm %s710_s30, 128  ;;  %p513_p13 = pneg %p716_p9 }
  0x14   : > { %p512_p12 = scmp.ne.s32.totalorder %s710_s30, %s511_s8  ;;  %s516_s11 = scalar_lea.hbm %s824_s0, 256 }
  0x15   : > { %p517_p2 = scmp.lt.u32.totalorder %s710_s30, %s824_s0  ;;  %p518_p3 = scmp.lt.u32.totalorder %s516_s11, %s511_s8 }
  0x16   : > { %p514_p0 = pnand %p513_p13, %p512_p12  ;;  %p520_p5 = scmp.lt.u32.totalorder %s511_s8, %s710_s30 }
  0x17   : > { %p519_p4 = por %p518_p3, %p517_p2 }
  0x18   : > { %p515_p1 = pneg %p514_p0 }
  0x19   : > { %p521_p6 = por %p520_p5, %p519_p4 }
  0x1b   : > { %p522_p8 = pnand %p521_p6, %p515_p1 }
  0x1d   : > { %525 = shalt.err (!%p522_p8)
}
  0x1e   : > { %s526_s20 = scalar_lea.vmem %s720_s5, 128  ;;  %s627_s21 = smov [#allocation4]  }
  0x1f   : > { %p527_p12 = scmp.ne.s32.totalorder %s720_s5, %s526_s20  ;;  %s531_s22 = sshll.u32 %s627_s21, 4  ;;  %s532_s22 = int_to_ptr.vmem [resolvable:$false] %s531_s22 }
  0x20   : > { %s533_s28 = scalar_lea.vmem %s532_s22, 256  ;;  %p534_p11 = scmp.lt.s32.totalorder %s720_s5, %s532_s22 }
  0x21   : > { %p529_p0 = pnand %p527_p12, %p513_p13  ;;  %p535_p2 = scmp.lt.s32.totalorder %s533_s28, %s526_s20 }
  0x23   : > { %p530_p10 = pneg %p529_p0  ;;  %p536_p3 = por %p535_p2, %p534_p11 }
  0x25   : > { %p537_p4 = pnand %p536_p3, %p530_p10 }
  0x27   : > { %540 = shalt.err (!%p537_p4)
}
  0x28   : > { %458 = dma.hbm_to_vmem [thread:$0]  (!%p716_p9), %s710_s30, 128, %s720_s5, %s159_s7  }
  0x29   : > { %p832_p1 = scmp.lt.s32.totalorder %s625_s17, 3  ;;  %p833_p5 = scmp.ge.s32.totalorder %s625_s17, 1 }
  0x2a   : > { %s763_s9 = scalar_lea.hbm %s825_s1, %s449_s26  ;;  %s183_s10 = scalar_lea.vmem [#allocation6], %s436_s27 }
  0x2b   : > { %p754_p6 = pnand %p833_p5, %p832_p1  ;;  %s193_s11 = sshll.u32 %s183_s10, 4  ;;  %s194_s11 = int_to_ptr.vmem [resolvable:$true] %s193_s11 }
  0x2c   : > { %s180_s30 = scalar_lea.sflag [#allocation7], %s701_s25  ;;  %s541_s5 = scalar_lea.hbm %s763_s9, 128 }
  0x2d   : > { %s834_s29 = scalar_select %p754_p6, 1, 0 }
  0x2e   : > { %p542_p10 = scmp.ne.s32.totalorder %s763_s9, %s541_s5  ;;  %s546_s26 = scalar_lea.hbm %s825_s1, 256 }
  0x2f   : > { %p547_p12 = scmp.lt.u32.totalorder %s763_s9, %s825_s1  ;;  %p548_p0 = scmp.lt.u32.totalorder %s546_s26, %s541_s5 }
  0x30   : > { %p544_p11 = pnand %p542_p10, %p513_p13  ;;  %p550_p3 = scmp.lt.u32.totalorder %s541_s5, %s763_s9 }
  0x31   : > { %p549_p2 = por %p548_p0, %p547_p12 }
  0x32   : > { %p545_p8 = pneg %p544_p11 }
  0x33   : > { %p551_p4 = por %p550_p3, %p549_p2 }
  0x35   : > { %p552_p1 = pnand %p551_p4, %p545_p8 }
  0x37   : > { %555 = shalt.err (!%p552_p1)
}
  0x38   : > { %s556_s25 = scalar_lea.vmem %s194_s11, 128  ;;  %s628_s27 = smov [#allocation6]  }
  0x39   : > { %p557_p5 = scmp.ne.s32.totalorder %s194_s11, %s556_s25  ;;  %s561_s21 = sshll.u32 %s628_s27, 4  ;;  %s562_s21 = int_to_ptr.vmem [resolvable:$false] %s561_s21 }
  0x3a   : > { %s563_s22 = scalar_lea.vmem %s562_s21, 256  ;;  %p564_p7 = scmp.lt.s32.totalorder %s194_s11, %s562_s21 }
  0x3b   : > { %p559_p10 = pnand %p557_p5, %p513_p13  ;;  %p565_p6 = scmp.lt.s32.totalorder %s563_s22, %s556_s25 }
  0x3d   : > { %p560_p11 = pneg %p559_p10  ;;  %p566_p0 = por %p565_p6, %p564_p7 }
  0x3f   : > { %p567_p12 = pnand %p566_p0, %p560_p11 }
  0x41   : > { %570 = shalt.err (!%p567_p12)
}
  0x42   : > { %461 = dma.hbm_to_vmem [thread:$0]  (!%p716_p9), %s763_s9, 128, %s194_s11, %s180_s30  }
  0x43   : > { %p835_p8 = scmp.ne.s32.totalorder %s834_s29, 0 }
  0x44   : > { %s204_s28 = sand.u32 (!%p835_p8), 1, %s609_s13   ;;  %p836_p13 = scmp.ne.s32.totalorder (!%p835_p8), %s830_s23, 0 }
  0x45   : > { %202 = sbr.rel (%p835_p8) target bundleno = 234 (0xea), region = 28  ;;  %s443_s4 = sshll.u32 (!%p835_p8), %s204_s28, 3 }
  0x46   : > { %s205_s8 = scalar_lea.sflag (!%p835_p8), [#allocation5], %s204_s28  ;;  %s208_s10 = scalar_lea.vmem (!%p835_p8), [#allocation4], %s443_s4 }
  0x4c   : > { %596 = dma.done.wait (%p836_p13), %s205_s8, 128  }
  0x4d   : > { %598 = vsyncadd (%p836_p13), %s205_s8, 4294967168  ;;  %s214_s5 = scalar_lea.sflag [#allocation7], %s204_s28  ;;  %s217_s7 = scalar_lea.vmem [#allocation6], %s443_s4 }
  0x4e   : > { %600 = dma.done.wait (%p836_p13), %s214_s5, 128  }
  0x4f   : > { %602 = vsyncadd (%p836_p13), %s214_s5, 4294967168  ;;  %v264_v0 = vld [vmem:[%s208_s10] sm:$0xff]  ;;  %v265_v1 = vld [vmem:[%s217_s7] sm:$0xff]  ;;  %vm281_vm0 = vcmask 1043456   ;;  %p250_p7 = scmp.lt.s32.totalorder %s617_s15, 1  ;;  %vm287_vm1 = vcmask 3072  }
  0x50   : > { %v267_v2 = vmul.f32 %v265_v1, %v264_v0  ;;  %v271_v3 = vadd.f32 %v265_v1, %v264_v0 }
  0x51   : > { %s845_s15 = smov (!%p250_p7, %s617_s15), 1 }
  0x52   : > { %v279_v4 = vcombine.high %v267_v2, %v267_v2  ;;  %v282_v5 = vsel %vm281_vm0, %v267_v2, 0.0  ;;  %v291_v6 = vcombine.high %v271_v3, %v271_v3  ;;  %v293_v8 = vsel %vm281_vm0, %v271_v3, 0.0  ;;  %s445_s23 = sshll.u32 %s845_s15, 2 }
  0x53   : > { %s253_s9 = scalar_lea.vmem %s826_s2, %s445_s23  ;;  %s257_s12 = scalar_lea.vmem %s827_s3, %s445_s23 }
  0x54   : > { %v283_v7 = vsel %vm281_vm0, %v279_v4, 0.0  ;;  %v294_v9 = vsel %vm281_vm0, %v291_v6, 0.0 }
  0x55   : > { %v284_v10 = vadd.f32 %v283_v7, %v282_v5  ;;  %v295_v11 = vadd.f32 %v294_v9, %v293_v8 }
  0x57   : > { %285 = vadd.xlane.f32.xlu0 %v284_v10 }
  0x5b   : > { %296 = vadd.xlane.f32.xlu0 %v295_v11 }
  0xe4   : > { %v286_v12 = vpop.xlane.xlu0 %285 }
  0xe5   : > { %288 = vst.msk [vmem:[%s253_s9] sm:$0xf] %vm287_vm1, %v286_v12 }
  0xe8   : > { %v297_v13 = vpop.xlane.xlu0 %296 }
  0xe9   : > { %298 = vst.msk [vmem:[%s257_s12] sm:$0xf] %vm287_vm1, %v297_v13 }
  0xea PF: > { %s20_s17 = sadd.s32 1, %s625_s17   ;;  %s837_s12 = smov %s609_s13 }
  0xeb   : > { %p17_p9 = scmp.ge.s32.totalorder %s20_s17, 4   ;;  %s838_s13 = smov %s613_s14 }
  0xec   : > { %s839_s14 = smov %s698_s24  ;;  %s840_s15 = smov %s621_s16 }
  0xed   : > { %s841_s16 = smov %s843_s19  ;;  %19 = sbr.rel (!%p17_p9) target bundleno = 6 (0x6), region = 101 }
  0xf4   :  { %332 = vsyncpa [#allocation5], 1 }
  0xf5   :  { %334 = vsyncpa [#allocation5 + $0x1], 1 }
  0xf6   :  { %335 = vsyncpa [#allocation7], 1 }
  0xf7   :  { %337 = vsyncpa [#allocation7 + $0x1], 1 }

</bundles_post_ra>
